<compile_context>
chip_gen: v7x
topology: tpu7x:2x2x1
jax: 0.10.0
libtpu: 0.0.40
codegen_flags: <defaults>
</compile_context>

<pallas_src>
import jax
import jax.numpy as jnp
from jax.experimental import pallas as pl
from jax.experimental.pallas import tpu as pltpu


def _mlp_kernel(x_ref, w1_ref, b1_ref, w2_ref, b2_ref, o_ref):
    # fc1: [TB, I] @ [I, H] on the MXU (bf16 operands, f32 accumulation).
    h = jnp.dot(x_ref[...], w1_ref[...], preferred_element_type=jnp.float32)
    h = h + b1_ref[...]                                     # f32 bias add (VPU)
    # Hardswish: x * relu6(x + 3) / 6, computed in f32.
    h = h * jnp.clip(h + 3.0, 0.0, 6.0) * (1.0 / 6.0)
    # fc2: [TB, H] @ [H, C]; activation cast back to the matmul dtype.
    out = jnp.dot(h.astype(w2_ref.dtype), w2_ref[...],
                  preferred_element_type=jnp.float32)
    out = out + b2_ref[...]
    o_ref[...] = out.astype(o_ref.dtype)


def _round_up(n, m):
    return ((n + m - 1) // m) * m


def prepare_params(w1, b1, w2, b2, *, matmul_dtype=jnp.bfloat16):
    """One-time parameter prep, hoisted out of the per-call forward.

    Matmul operands (weights) are cast to bf16 for the native MXU rate and
    half the HBM bytes; biases stay f32 (bias add + Hardswish run in f32).
    """
    return (jnp.asarray(w1, matmul_dtype), jnp.asarray(b1, jnp.float32),
            jnp.asarray(w2, matmul_dtype), jnp.asarray(b2, jnp.float32))


def network_forward(x, w1, b1, w2, b2, *, max_batch_tile=1024):
    """x: [B, I]; w1: [I, H]; b1: [1, H]; w2: [H, C]; b2: [1, C] -> [B, C] f32.

    Expects parameters already run through prepare_params().
    """
    B, I = x.shape
    H = w1.shape[1]
    C = w2.shape[1]

    # Stream x in the matmul dtype (no-op if the caller already provides bf16;
    # otherwise this cast typically fuses with the upstream producer).
    x = x.astype(w1.dtype)
    in_bytes = jnp.dtype(w1.dtype).itemsize
    w_bytes = in_bytes

    # Batch tile: multiple of 8 sublanes; when B > 8 force >= 2 grid steps so
    # the "parallel" axis can be split across v7x's two TensorCores.
    if B > 8:
        tb_target = _round_up(pl.cdiv(B, 2), 8)
    else:
        tb_target = _round_up(B, 8)
    TB = max(8, min(max_batch_tile, tb_target))

    # VMEM footprint: double-buffered x/out tiles + (default double-buffered)
    # resident weights/biases + f32 intermediates.  Shrink TB if needed.
    def vmem_need(tb):
        return (2 * tb * I * in_bytes                 # x pipeline buffers
                + 2 * tb * C * 4                      # out pipeline buffers (f32)
                + 2 * ((I * H + H * C) * w_bytes + (H + C) * 4)   # weights/biases
                + tb * H * 4 + tb * C * 4)            # f32 h / out temporaries

    VMEM_BUDGET = 48 * 1024 * 1024   # headroom under v7x's 64 MiB VMEM
    while TB > 8 and vmem_need(TB) > VMEM_BUDGET:
        TB = max(8, _round_up(TB // 2, 8))
    if vmem_need(TB) > VMEM_BUDGET:
        # TODO(synk): very large H/C need a K-tiled grid axis over H with a
        # (TB, C) f32 VMEM accumulator instead of fully-resident weights.
        raise ValueError("hidden/class dims too large for resident-weight scheme")

    grid = (pl.cdiv(B, TB),)
    vmem_limit = int(min(max(2 * vmem_need(TB), 16 * 1024 * 1024), VMEM_BUDGET))

    return pl.pallas_call(
        _mlp_kernel,
        out_shape=jax.ShapeDtypeStruct((B, C), jnp.float32),
        grid_spec=pltpu.PrefetchScalarGridSpec(
            num_scalar_prefetch=0,
            grid=grid,
            in_specs=[
                pl.BlockSpec((TB, I), lambda i: (i, 0)),   # x: streamed over batch
                pl.BlockSpec((I, H), lambda i: (0, 0)),    # w1: VMEM-resident
                pl.BlockSpec((1, H), lambda i: (0, 0)),    # b1: VMEM-resident
                pl.BlockSpec((H, C), lambda i: (0, 0)),    # w2: VMEM-resident
                pl.BlockSpec((1, C), lambda i: (0, 0)),    # b2: VMEM-resident
            ],
            out_specs=pl.BlockSpec((TB, C), lambda i: (i, 0)),
        ),
        compiler_params=pltpu.CompilerParams(
            dimension_semantics=("parallel",),
            vmem_limit_bytes=vmem_limit,
        ),
        cost_estimate=pl.CostEstimate(
            flops=2 * B * (I * H + H * C),
            transcendentals=0,
            bytes_accessed=(B * I * in_bytes + (I * H + H * C) * w_bytes
                            + (H + C) * 4 + B * C * 4),
        ),
    )(x, w1, b1, w2, b2)


def _reference_bf16(x, w1, b1, w2, b2):
    # Mirrors the kernel's dtype policy: bf16 matmul operands, f32 accumulate.
    bf16 = jnp.bfloat16
    h = jnp.dot(x.astype(bf16), w1.astype(bf16),
                preferred_element_type=jnp.float32) + b1.astype(jnp.float32)
    h = h * jnp.clip(h + 3.0, 0.0, 6.0) / 6.0
    return jnp.dot(h.astype(bf16), w2.astype(bf16),
                   preferred_element_type=jnp.float32) + b2.astype(jnp.float32)


if __name__ == "__main__":
    # Small shapes consistent with the module's forward.
    batch, input_size, hidden_size, num_classes = 8, 32, 32, 8

    key = jax.random.PRNGKey(0)
    kx, kw1, kb1, kw2, kb2 = jax.random.split(key, 5)

    x = jax.random.normal(kx, (batch, input_size), dtype=jnp.float32)

    # Deterministic parameter init (uniform in +/- 1/sqrt(fan_in), like nn.Linear).
    lim1 = 1.0 / float(input_size) ** 0.5
    w1 = jax.random.uniform(kw1, (input_size, hidden_size), jnp.float32, -lim1, lim1)
    b1 = jax.random.uniform(kb1, (1, hidden_size), jnp.float32, -lim1, lim1)

    lim2 = 1.0 / float(hidden_size) ** 0.5
    w2 = jax.random.uniform(kw2, (hidden_size, num_classes), jnp.float32, -lim2, lim2)
    b2 = jax.random.uniform(kb2, (1, num_classes), jnp.float32, -lim2, lim2)

    # One-time parameter prep (hoisted out of the forward pass).
    w1p, b1p, w2p, b2p = prepare_params(w1, b1, w2, b2)

    out = jax.jit(network_forward)(x, w1p, b1p, w2p, b2p)
    out = jax.block_until_ready(out)

    assert out.shape == (batch, num_classes)

    # Check against a dtype-mirrored reference (bf16 operands, f32 accumulate).
    ref = _reference_bf16(x, w1, b1, w2, b2)
    assert jnp.allclose(out, ref, atol=1e-4, rtol=1e-4)

    # Sanity-check against full-f32 math with a bf16-appropriate tolerance.
    h32 = x @ w1 + b1
    h32 = h32 * jnp.clip(h32 + 3.0, 0.0, 6.0) / 6.0
    ref32 = h32 @ w2 + b2
    assert jnp.allclose(out, ref32, atol=5e-2, rtol=5e-2)

    # TODO(synk): the PyTorch module runs in float64; TPU has no f64 MXU path,
    # so this computes bf16 matmuls with f32 accumulation (documented deviation).
    print("KERNEL_OK")
</pallas_src>

<mosaic_0001>
module attributes {stable_mosaic.version = 11 : i64} {
  func.func @_mlp_kernel(%arg0: i32, %arg1: memref<8x32xbf16, #tpu.memory_space<vmem>>, %arg2: memref<32x32xbf16, #tpu.memory_space<vmem>>, %arg3: memref<1x32xf32, #tpu.memory_space<vmem>>, %arg4: memref<32x8xbf16, #tpu.memory_space<vmem>>, %arg5: memref<1x8xf32, #tpu.memory_space<vmem>>, %arg6: memref<8x8xf32, #tpu.memory_space<vmem>>) attributes {dimension_semantics = [#tpu.dimension_semantics<parallel>], iteration_bounds = array<i64: 1>, scalar_prefetch = 0 : i64, scratch_operands = 0 : i64, tpu.core_type = #tpu.core_type<tc>, window_params = [{transform_indices = @transform_0, window_bounds = array<i64: 8, 32>}, {pipeline_mode = #tpu.pipeline_mode<synchronous>, transform_indices = @transform_1, window_bounds = array<i64: 32, 32>}, {pipeline_mode = #tpu.pipeline_mode<synchronous>, transform_indices = @transform_2, window_bounds = array<i64: 1, 32>}, {pipeline_mode = #tpu.pipeline_mode<synchronous>, transform_indices = @transform_3, window_bounds = array<i64: 32, 8>}, {pipeline_mode = #tpu.pipeline_mode<synchronous>, transform_indices = @transform_4, window_bounds = array<i64: 1, 8>}, {transform_indices = @transform_5, window_bounds = array<i64: 8, 8>}]} {
    %c0 = arith.constant 0 : index
    %c0_0 = arith.constant 0 : index
    %0 = vector.load %arg1[%c0, %c0_0] : memref<8x32xbf16, #tpu.memory_space<vmem>>, vector<8x32xbf16>
    %c0_1 = arith.constant 0 : index
    %c0_2 = arith.constant 0 : index
    %1 = vector.load %arg2[%c0_1, %c0_2] : memref<32x32xbf16, #tpu.memory_space<vmem>>, vector<32x32xbf16>
    %cst = arith.constant dense<0.000000e+00> : vector<8x32xf32>
    %2 = tpu.matmul %0, %1, %cst {dimension_numbers = #tpu.dot_dimension_numbers<[1], [0], [0], [1], [0, 0, 1, 1], [], []>} : vector<8x32xbf16>, vector<32x32xbf16>, vector<8x32xf32> -> vector<8x32xf32>
    %c0_3 = arith.constant 0 : index
    %c0_4 = arith.constant 0 : index
    %3 = vector.load %arg3[%c0_3, %c0_4] : memref<1x32xf32, #tpu.memory_space<vmem>>, vector<1x32xf32>
    %4 = vector.broadcast %3 : vector<1x32xf32> to vector<8x32xf32>
    %5 = arith.addf %2, %4 : vector<8x32xf32>
    %cst_5 = arith.constant 3.000000e+00 : f32
    %6 = vector.broadcast %cst_5 : f32 to vector<8x32xf32>
    %7 = arith.addf %5, %6 : vector<8x32xf32>
    %cst_6 = arith.constant 0.000000e+00 : f32
    %cst_7 = arith.constant 6.000000e+00 : f32
    %8 = vector.broadcast %cst_6 : f32 to vector<8x32xf32>
    %9 = arith.maximumf %8, %7 : vector<8x32xf32>
    %10 = vector.broadcast %cst_7 : f32 to vector<8x32xf32>
    %11 = arith.minimumf %10, %9 : vector<8x32xf32>
    %12 = arith.mulf %5, %11 : vector<8x32xf32>
    %cst_8 = arith.constant 0.166666672 : f32
    %13 = vector.broadcast %cst_8 : f32 to vector<8x32xf32>
    %14 = arith.mulf %12, %13 : vector<8x32xf32>
    %15 = arith.truncf %14 : vector<8x32xf32> to vector<8x32xbf16>
    %c0_9 = arith.constant 0 : index
    %c0_10 = arith.constant 0 : index
    %16 = vector.load %arg4[%c0_9, %c0_10] : memref<32x8xbf16, #tpu.memory_space<vmem>>, vector<32x8xbf16>
    %cst_11 = arith.constant dense<0.000000e+00> : vector<8x8xf32>
    %17 = tpu.matmul %15, %16, %cst_11 {dimension_numbers = #tpu.dot_dimension_numbers<[1], [0], [0], [1], [0, 0, 1, 1], [], []>} : vector<8x32xbf16>, vector<32x8xbf16>, vector<8x8xf32> -> vector<8x8xf32>
    %c0_12 = arith.constant 0 : index
    %c0_13 = arith.constant 0 : index
    %18 = vector.load %arg5[%c0_12, %c0_13] : memref<1x8xf32, #tpu.memory_space<vmem>>, vector<1x8xf32>
    %19 = vector.broadcast %18 : vector<1x8xf32> to vector<8x8xf32>
    %20 = arith.addf %17, %19 : vector<8x8xf32>
    %c0_14 = arith.constant 0 : index
    %c0_15 = arith.constant 0 : index
    %21 = vector.load %arg6[%c0_14, %c0_15] : memref<8x8xf32, #tpu.memory_space<vmem>>, vector<8x8xf32>
    tpu.vector_store %arg6[%c0_14, %c0_15], %20 {strides = array<i32>} : memref<8x8xf32, #tpu.memory_space<vmem>>, vector<8x8xf32>,
    return
  }
  func.func @transform_0(%arg0: i32) -> (i32, i32) {
    %c0_i32 = arith.constant 0 : i32
    %c0_i32_0 = arith.constant 0 : i32
    return %arg0, %c0_i32 : i32, i32
  }
  func.func @transform_1(%arg0: i32) -> (i32, i32) {
    %c0_i32 = arith.constant 0 : i32
    %c0_i32_0 = arith.constant 0 : i32
    %c0_i32_1 = arith.constant 0 : i32
    return %c0_i32, %c0_i32_0 : i32, i32
  }
  func.func @transform_2(%arg0: i32) -> (i32, i32) {
    %c0_i32 = arith.constant 0 : i32
    %c0_i32_0 = arith.constant 0 : i32
    %c0_i32_1 = arith.constant 0 : i32
    return %c0_i32, %c0_i32_0 : i32, i32
  }
  func.func @transform_3(%arg0: i32) -> (i32, i32) {
    %c0_i32 = arith.constant 0 : i32
    %c0_i32_0 = arith.constant 0 : i32
    %c0_i32_1 = arith.constant 0 : i32
    return %c0_i32, %c0_i32_0 : i32, i32
  }
  func.func @transform_4(%arg0: i32) -> (i32, i32) {
    %c0_i32 = arith.constant 0 : i32
    %c0_i32_0 = arith.constant 0 : i32
    %c0_i32_1 = arith.constant 0 : i32
    return %c0_i32, %c0_i32_0 : i32, i32
  }
  func.func @transform_5(%arg0: i32) -> (i32, i32) {
    %c0_i32 = arith.constant 0 : i32
    %c0_i32_0 = arith.constant 0 : i32
    return %arg0, %c0_i32 : i32, i32
  }
}

</mosaic_0001>

<bundles_post_ra>
// kernel: network_forward.1
= control target key start
LH: loop header
LB: loop body
LE: loop exit
PB: predicated region body
PF: predicated region fallthrough
CT: control target
= control target key end

     0   :  { %v239_v1 = vmov 0.0   ;;  %vm240_vm0 = vmmov 0   ;;  %s307_s0 = inlined_call_operand.vmem [shape: bf16[8,32], index: 0, kind: input, shape index: {}]   ;;  %s308_s1 = inlined_call_operand.vmem [shape: bf16[32,32], index: 1, kind: input, shape index: {}]   ;;  %s309_s2 = inlined_call_operand.vmem [shape: f32[1,32], index: 2, kind: input, shape index: {}]   ;;  %s310_s3 = inlined_call_operand.vmem [shape: bf16[32,8], index: 3, kind: input, shape index: {}]   ;;  %s311_s4 = inlined_call_operand.vmem [shape: f32[1,8], index: 4, kind: input, shape index: {}]   ;;  %s312_s5 = inlined_call_operand.hbm [shape: f32[8,8], index: 5, kind: output, shape index: {}]  }
   0x1   :  { %v211_v0 = vld [vmem:[%s308_s1] sm:$0xff]   ;;  %192 = vmatprep.subr.bf16.mxu0 %v239_v1  ;;  %200 = vmatprep.subr.bf16.mxu1 %v239_v1  ;;  %v212_v2 = vld [vmem:[%s308_s1 + $0x8] sm:$0xff]  }
   0x2   :  { %193 = vmatpush3.bf16.msra.mxu0 %v211_v0  ;;  %196 = vmatprep.mubr.msk.bf16.mxu0 %vm240_vm0, %v239_v1 }
   0x3   :  { %194 = vmatprep.subr.bf16.mxu0 %v239_v1  ;;  %204 = vmatprep.mubr.msk.bf16.mxu1 %vm240_vm0, %v239_v1 }
   0x4   :  { %10 = vsyncpa [#allocation3], 0  ;;  %v22_v3 = vld [vmem:[%s307_s0] sm:$0xf]  ;;  %vm46_vm1 = vcmask 261120   ;;  %v214_v5 = vld [vmem:[%s310_s3 + $0x8] sm:$0xff]  }
   0x5   :  { %v213_v4 = vld [vmem:[%s310_s3] sm:$0xff]   ;;  %s241_s29 = smov [#allocation2]   ;;  %vm162_vm2 = vcmask 64512  }
   0x6   :  { %195 = vmatpush3.bf16.msra.mxu0 %v212_v2  ;;  %201 = vmatpush3.bf16.msra.mxu1 %v213_v4  ;;  %v178_v6 = vld [vmem:[%s309_s2] ss:$0 sm:$0xff]  ;;  %s170_s30 = sshll.u32 %s241_s29, 4  ;;  %s171_s30 = int_to_ptr.vmem [resolvable:$true] %s170_s30 }
   0x7   :  { %202 = vmatprep.subr.bf16.mxu1 %v239_v1  ;;  %v182_v18 = vld [vmem:[%s311_s4] ss:$0 sm:$0xff]  ;;  %s215_s2 = scalar_lea.vmem %s171_s30, 128  ;;  %p220_p1 = scmp.lt.s32.totalorder %s171_s30, %s171_s30 }
   0x8   :  { %p216_p0 = scmp.ne.s32.totalorder %s171_s30, %s215_s2  ;;  %p221_p2 = scmp.lt.s32.totalorder %s215_s2, %s215_s2 }
   0x9   :  { %197 = vmatmul.mubr.msk.bf16.vlgmr.msra.gmra.mrb[0].mxu0 %vm46_vm1, %v22_v3 }
   0xa   :  { %203 = vmatpush3.bf16.msra.mxu1 %v214_v5  ;;  %p222_p3 = por %p221_p2, %p220_p1 }
   0xc   :  { %p223_p4 = pnand %p222_p3, %p216_p0 }
  0xdc   :  { %v84_v7 = vpop.f32.mrb[0].mxu0 }
  0xdd   :  { %v85_v8 = vadd.f32 %v178_v6, %v84_v7  ;;  %v198_v9 = vpop.f32.mrb[1].mxu0 }
  0xde   :  { %v87_v10 = vpop.f32.mrb[2].mxu0 }
  0xdf   :  { %v90_v11 = vadd.f32 3.0, %v85_v8  ;;  %v199_v12 = vpop.f32.mrb[3].mxu0 }
  0xe1   :  { %v91_v13 = vmax.f32 %v90_v11, 0.0 }
  0xe3   :  { %v92_v14 = vmin.f32 %v91_v13, 6.0 }
  0xe5   :  { %v93_v15 = vmul.f32 %v92_v14, %v85_v8 }
  0xe7   :  { %v94_v16 = vmul.f32 0.16666667, %v93_v15 }
  0xe9   :  { %v95_v17 = vpack.c.bf16 %v94_v16, %v94_v16 }
  0xeb   :  { %205 = vmatmul.mubr.msk.bf16.vlgmr.msra.gmra.mrb[0].mxu1 %vm46_vm1, %v95_v17 }
 0x1be   :  { %v156_v19 = vpop.f32.mrb[0].mxu1 }
 0x1bf   :  { %v157_v20 = vadd.f32 %v182_v18, %v156_v19  ;;  %v206_v21 = vpop.f32.mrb[1].mxu1 }
 0x1c0   :  { %v159_v22 = vpop.f32.mrb[2].mxu1 }
 0x1c1   :  { %v207_v23 = vpop.f32.mrb[3].mxu1  ;;  %163 = vst.msk [vmem:[#allocation2] sm:$0xff] %vm162_vm2, %v157_v20 }
 0x1c2   :  { %226 = shalt.err (!%p223_p4)
}
 0x1c3   :  { %s227_s4 = scalar_lea.hbm %s312_s5, 128 }
 0x1c4   :  { %p228_p5 = scmp.ne.s32.totalorder %s312_s5, %s227_s4  ;;  %p231_p6 = scmp.lt.u32.totalorder %s227_s4, %s312_s5 }
 0x1c6   :  { %p233_p7 = pnand %p231_p6, %p228_p5 }
 0x1c8   :  { %236 = shalt.err (!%p233_p7)
}
 0x1c9   :  { %173 = dma.vmem_to_hbm [thread:$0]  %s171_s30, 128, %s312_s5, [#allocation3]  }
 0x1ca   :  { %237 = dma.done.wait [#allocation3], 128  }
 0x1cb   :  { %238 = vsyncadd [#allocation3], 4294967168 }
 0x1cc   :  { %177 = vsyncpa [#allocation3], 1 }

</bundles_post_ra>
